<compile_context>
chip_gen: v6e
topology: v6e:2x2x1
jax: 0.10.0
libtpu: 0.0.40
codegen_flags: <defaults>
</compile_context>

<pallas_src>
import functools

import jax
import jax.numpy as jnp
from jax.experimental import pallas as pl
from jax.experimental.pallas import tpu as pltpu

_LANE = 128
_TARGET_BLOCK_ELEMS = 512 * 1024            # ~2 MiB f32 per input per buffer
_MAX_COLS = _TARGET_BLOCK_ELEMS // 8        # largest lane-row we will stream
_NUM_PARTS = 2                              # leading "parallel" axis (megacore)
_VMEM_LIMIT_BYTES = 32 * 1024 * 1024        # explicit scoped-VMEM budget


def _loss_kernel(pred_ref, depth_ref, sum_ref, cnt_ref, *,
                 squared, valid_rows, blocks_per_part, block_rows, cols):
    c = pl.program_id(0)      # partition ("parallel")
    i = pl.program_id(1)      # block within partition ("arbitrary"/reduction)

    @pl.when(i == 0)
    def _init():
        sum_ref[...] = jnp.zeros_like(sum_ref)
        cnt_ref[...] = jnp.zeros_like(cnt_ref)

    # Intended (unclamped) global row offset of this block.  Rows past the end
    # of the slab (ragged last block, or the clamped duplicate blocks of the
    # last partition) are masked out entirely on the tail path, so any garbage
    # read there (including NaN/Inf) never reaches the sum or the count.
    base_row = (c * blocks_per_part + i) * block_rows

    def _accumulate(mask_rows):
        p = pred_ref[...].astype(jnp.float32)
        d = depth_ref[...].astype(jnp.float32)
        valid = d != 0.0
        if mask_rows:
            row_ids = base_row + jax.lax.broadcasted_iota(
                jnp.int32, (block_rows, cols), 0)
            valid = valid & (row_ids < valid_rows)
        # Exact divide; d == 0 (or tail garbage) yields inf which the select
        # below replaces with 0.0 (jnp.where is a select, nothing propagates).
        inv_gt = 1.0 / d
        diff = p - inv_gt
        err = diff * diff if squared else jnp.abs(diff)
        err = jnp.where(valid, err, 0.0)
        # Axis-0 (sublane) reduction: vreg adds on the VPU plus one cheap
        # per-block fold; the expensive cross-lane reduce stays outside.
        sum_ref[...] += err.sum(axis=0)[None, None, :]
        cnt_ref[...] += valid.astype(jnp.int32).sum(axis=0)[None, None, :]

    needs_row_mask = base_row + block_rows > valid_rows

    @pl.when(needs_row_mask)
    def _tail():
        _accumulate(True)

    @pl.when(jnp.logical_not(needs_row_mask))
    def _full():
        _accumulate(False)


def supervised_inverse_depth_loss(inv_depth_pred, depth_map, method="l1"):
    """JAX/Pallas equivalent of SupervisedInverseDepthLoss.forward."""
    if method == "l1":
        squared = False
    elif method == "mse":
        squared = True
    else:
        raise ValueError("Unknown supervised loss function")

    assert inv_depth_pred.shape == depth_map.shape
    shape = depth_map.shape
    n = 1
    for s in shape:
        n *= s

    # Copy-free lane view: (n/128, 128) when possible, otherwise fold trailing
    # dims (an exact divisor of n) into the lane dimension.  No jnp.pad
    # full-array copy in either case.
    if n % _LANE == 0:
        cols = _LANE
    else:
        cols = 1
        for s in reversed(shape):
            cols *= s
            if cols >= _LANE:
                break

    flat_p = inv_depth_pred.reshape(-1)
    flat_d = depth_map.reshape(-1)

    if cols > _MAX_COLS:
        # Degenerate fallback (e.g. huge prime-length 1-D input): pad the flat
        # arrays to a lane multiple.  Padded depth==0 elements are excluded by
        # the in-kernel mask.  Never hit for normal NCHW depth maps.
        pad = (-n) % _LANE
        if pad:
            flat_p = jnp.pad(flat_p, (0, pad))
            flat_d = jnp.pad(flat_d, (0, pad))
        cols = _LANE

    rows = flat_p.shape[0] // cols
    p2 = flat_p.reshape(rows, cols)
    d2 = flat_d.reshape(rows, cols)

    # Block sizing: ~2 MiB f32 of payload per input per pipeline buffer.
    target_rows = max(8, (_TARGET_BLOCK_ELEMS // max(cols, 1)) // 8 * 8)
    block_rows = rows if rows <= target_rows else target_rows   # mult of 8 or full

    total_blocks = pl.cdiv(rows, block_rows)
    # Enable the 2-partition "parallel" axis only when the (at most one)
    # clamp-duplicated tail block is a negligible fraction of the work.
    if total_blocks >= 2 and (total_blocks % _NUM_PARTS == 0 or total_blocks >= 8):
        num_parts = _NUM_PARTS
    else:
        num_parts = 1
    blocks_per_part = pl.cdiv(total_blocks, num_parts)

    def in_idx(c, i):
        # Clamp keeps every DMA in bounds; an out-of-range (c, i) re-reads the
        # last block and is fully neutralised by the in-kernel row mask.
        return (jnp.minimum(c * blocks_per_part + i, total_blocks - 1), 0)

    def out_idx(c, i):
        return (c, 0, 0)

    kernel = functools.partial(
        _loss_kernel, squared=squared, valid_rows=rows,
        blocks_per_part=blocks_per_part, block_rows=block_rows, cols=cols)

    in_bytes = p2.size * p2.dtype.itemsize + d2.size * d2.dtype.itemsize
    out_bytes = 2 * num_parts * cols * 4

    sums, cnts = pl.pallas_call(
        kernel,
        out_shape=(
            jax.ShapeDtypeStruct((num_parts, 1, cols), jnp.float32),
            jax.ShapeDtypeStruct((num_parts, 1, cols), jnp.int32),
        ),
        grid_spec=pltpu.PrefetchScalarGridSpec(
            num_scalar_prefetch=0,
            grid=(num_parts, blocks_per_part),
            in_specs=[
                pl.BlockSpec((block_rows, cols), in_idx),
                pl.BlockSpec((block_rows, cols), in_idx),
            ],
            out_specs=[
                pl.BlockSpec((1, 1, cols), out_idx),
                pl.BlockSpec((1, 1, cols), out_idx),
            ],
        ),
        compiler_params=pltpu.CompilerParams(
            dimension_semantics=("parallel", "arbitrary"),
            vmem_limit_bytes=_VMEM_LIMIT_BYTES),
        cost_estimate=pl.CostEstimate(
            flops=5 * p2.size, transcendentals=p2.size,
            bytes_accessed=in_bytes + out_bytes),
    )(p2, d2)

    total_err = jnp.sum(sums)
    total_cnt = jnp.sum(cnts).astype(jnp.float32)
    # Mean over masked elements (nan if the mask is empty, matching torch).
    return total_err / total_cnt


def _reference_loss(inv_depth_pred, depth_map, method="l1"):
    mask = depth_map != 0
    inv_gt = jnp.where(mask, 1.0 / jnp.where(mask, depth_map, 1.0), 0.0)
    diff = inv_depth_pred - inv_gt
    err = diff * diff if method == "mse" else jnp.abs(diff)
    err = jnp.where(mask, err, 0.0)
    return jnp.sum(err) / jnp.sum(mask.astype(jnp.float32))


if __name__ == "__main__":
    key = jax.random.PRNGKey(0)
    ks = jax.random.split(key, 9)

    def make_inputs(kp, kd, km, shape):
        pred = jax.random.uniform(kp, shape, jnp.float32, 0.1, 2.0)
        depth = jax.random.uniform(kd, shape, jnp.float32, 0.5, 10.0)
        drop = jax.random.uniform(km, shape) < 0.3   # ~30% invalid pixels
        depth = jnp.where(drop, 0.0, depth)
        return pred, depth

    # Small NCHW test (single-channel depth maps, like the PyTorch module).
    pred_s, depth_s = make_inputs(ks[0], ks[1], ks[2], (2, 1, 16, 16))
    for method in ("l1", "mse"):
        loss = jax.block_until_ready(
            supervised_inverse_depth_loss(pred_s, depth_s, method=method))
        ref = _reference_loss(pred_s, depth_s, method=method)
        assert jnp.allclose(loss, ref, rtol=1e-4, atol=1e-6), (method, loss, ref)

    # Non-lane-multiple element count: exercises the copy-free (rows, W) view
    # (no jnp.pad) with a single full block and the fast (no row mask) path.
    pred_m, depth_m = make_inputs(ks[3], ks[4], ks[5], (1, 1, 600, 600))
    loss = jax.block_until_ready(
        supervised_inverse_depth_loss(pred_m, depth_m, method="l1"))
    ref = _reference_loss(pred_m, depth_m, method="l1")
    assert jnp.allclose(loss, ref, rtol=5e-4, atol=1e-6), (loss, ref)

    # Lane-multiple, multi-block case: exercises the two-partition "parallel"
    # axis and the ragged-tail (row-masked) block.
    pred_l, depth_l = make_inputs(ks[6], ks[7], ks[8], (2, 1, 600, 600))
    loss = jax.block_until_ready(
        supervised_inverse_depth_loss(pred_l, depth_l, method="mse"))
    ref = _reference_loss(pred_l, depth_l, method="mse")
    assert jnp.allclose(loss, ref, rtol=5e-4, atol=1e-6), (loss, ref)

    print("KERNEL_OK")
</pallas_src>

<mosaic_0001>
module attributes {stable_mosaic.version = 11 : i64} {
  func.func @_loss_kernel(%arg0: i32, %arg1: i32, %arg2: memref<4x128xf32, #tpu.memory_space<vmem>>, %arg3: memref<4x128xf32, #tpu.memory_space<vmem>>, %arg4: memref<1x1x128xf32, #tpu.memory_space<vmem>>, %arg5: memref<1x1x128xi32, #tpu.memory_space<vmem>>) attributes {dimension_semantics = [#tpu.dimension_semantics<parallel>, #tpu.dimension_semantics<arbitrary>], iteration_bounds = array<i64: 1, 1>, scalar_prefetch = 0 : i64, scratch_operands = 0 : i64, tpu.core_type = #tpu.core_type<tc>, window_params = [{transform_indices = @transform_0, window_bounds = array<i64: 4, 128>}, {transform_indices = @transform_1, window_bounds = array<i64: 4, 128>}, {transform_indices = @transform_2, window_bounds = array<i64: 1, 1, 128>}, {transform_indices = @transform_3, window_bounds = array<i64: 1, 1, 128>}]} {
    %c0_i32 = arith.constant 0 : i32
    %0 = arith.cmpi eq, %arg1, %c0_i32 : i32
    %1 = arith.extui %0 : i1 to i32
    %c0_i32_0 = arith.constant 0 : i32
    %2 = arith.cmpi ne, %1, %c0_i32_0 : i32
    scf.if %2 {
      %cst = arith.constant 0.000000e+00 : f32
      %13 = vector.broadcast %cst : f32 to vector<1x1x128xf32>
      %c0 = arith.constant 0 : index
      %c0_5 = arith.constant 0 : index
      %c0_6 = arith.constant 0 : index
      %14 = vector.load %arg4[%c0, %c0_5, %c0_6] : memref<1x1x128xf32, #tpu.memory_space<vmem>>, vector<1x1x128xf32>
      tpu.vector_store %arg4[%c0, %c0_5, %c0_6], %13 {strides = array<i32>} : memref<1x1x128xf32, #tpu.memory_space<vmem>>, vector<1x1x128xf32>,
      %c0_i32_7 = arith.constant 0 : i32
      %15 = vector.broadcast %c0_i32_7 : i32 to vector<1x1x128xi32>
      %c0_8 = arith.constant 0 : index
      %c0_9 = arith.constant 0 : index
      %c0_10 = arith.constant 0 : index
      %16 = vector.load %arg5[%c0_8, %c0_9, %c0_10] : memref<1x1x128xi32, #tpu.memory_space<vmem>>, vector<1x1x128xi32>
      tpu.vector_store %arg5[%c0_8, %c0_9, %c0_10], %15 {strides = array<i32>} : memref<1x1x128xi32, #tpu.memory_space<vmem>>, vector<1x1x128xi32>,
    } else {
    }
    %c1_i32 = arith.constant 1 : i32
    %3 = arith.muli %arg0, %c1_i32 : i32
    %4 = arith.addi %3, %arg1 : i32
    %c4_i32 = arith.constant 4 : i32
    %5 = arith.muli %4, %c4_i32 : i32
    %c4_i32_1 = arith.constant 4 : i32
    %6 = arith.addi %5, %c4_i32_1 : i32
    %c4_i32_2 = arith.constant 4 : i32
    %7 = arith.cmpi sgt, %6, %c4_i32_2 : i32
    %8 = arith.extui %7 : i1 to i32
    %c0_i32_3 = arith.constant 0 : i32
    %9 = arith.cmpi ne, %8, %c0_i32_3 : i32
    scf.if %9 {
      %c0 = arith.constant 0 : index
      %c0_5 = arith.constant 0 : index
      %13 = vector.load %arg2[%c0, %c0_5] : memref<4x128xf32, #tpu.memory_space<vmem>>, vector<4x128xf32>
      %c0_6 = arith.constant 0 : index
      %c0_7 = arith.constant 0 : index
      %14 = vector.load %arg3[%c0_6, %c0_7] : memref<4x128xf32, #tpu.memory_space<vmem>>, vector<4x128xf32>
      %cst = arith.constant 0.000000e+00 : f32
      %15 = vector.broadcast %cst : f32 to vector<4x128xf32>
      %16 = arith.cmpf one, %14, %15 : vector<4x128xf32>
      %17 = tpu.iota {dimensions = array<i32: 0>} : vector<4x128xi32>
      %18 = vector.broadcast %5 : i32 to vector<4x128xi32>
      %19 = arith.addi %18, %17 : vector<4x128xi32>
      %c4_i32_8 = arith.constant 4 : i32
      %20 = vector.broadcast %c4_i32_8 : i32 to vector<4x128xi32>
      %21 = arith.cmpi slt, %19, %20 : vector<4x128xi32>
      %22 = arith.andi %16, %21 : vector<4x128xi1>
      %cst_9 = arith.constant 1.000000e+00 : f32
      %23 = vector.broadcast %cst_9 : f32 to vector<4x128xf32>
      %24 = arith.divf %23, %14 : vector<4x128xf32>
      %25 = arith.subf %13, %24 : vector<4x128xf32>
      %26 = math.absf %25 : vector<4x128xf32>
      %cst_10 = arith.constant 0.000000e+00 : f32
      %27 = vector.broadcast %cst_10 : f32 to vector<4x128xf32>
      %28 = arith.select %22, %26, %27 : vector<4x128xi1>, vector<4x128xf32>
      %c0_11 = arith.constant 0 : index
      %c0_12 = arith.constant 0 : index
      %c0_13 = arith.constant 0 : index
      %29 = vector.load %arg4[%c0_11, %c0_12, %c0_13] : memref<1x1x128xf32, #tpu.memory_space<vmem>>, vector<1x1x128xf32>
      %cst_14 = arith.constant dense<0.000000e+00> : vector<128xf32>
      %30 = vector.multi_reduction <add>, %28, %cst_14 [0] : vector<4x128xf32> to vector<128xf32>
      %31 = vector.shape_cast %30 : vector<128xf32> to vector<1x1x128xf32>
      %32 = arith.addf %29, %31 : vector<1x1x128xf32>
      %c0_15 = arith.constant 0 : index
      %c0_16 = arith.constant 0 : index
      %c0_17 = arith.constant 0 : index
      %33 = vector.load %arg4[%c0_15, %c0_16, %c0_17] : memref<1x1x128xf32, #tpu.memory_space<vmem>>, vector<1x1x128xf32>
      tpu.vector_store %arg4[%c0_15, %c0_16, %c0_17], %32 {strides = array<i32>} : memref<1x1x128xf32, #tpu.memory_space<vmem>>, vector<1x1x128xf32>,
      %c0_18 = arith.constant 0 : index
      %c0_19 = arith.constant 0 : index
      %c0_20 = arith.constant 0 : index
      %34 = vector.load %arg5[%c0_18, %c0_19, %c0_20] : memref<1x1x128xi32, #tpu.memory_space<vmem>>, vector<1x1x128xi32>
      %35 = arith.extui %22 : vector<4x128xi1> to vector<4x128xi32>
      %cst_21 = arith.constant dense<0> : vector<128xi32>
      %36 = vector.multi_reduction <add>, %35, %cst_21 [0] : vector<4x128xi32> to vector<128xi32>
      %37 = vector.shape_cast %36 : vector<128xi32> to vector<1x1x128xi32>
      %38 = arith.addi %34, %37 : vector<1x1x128xi32>
      %c0_22 = arith.constant 0 : index
      %c0_23 = arith.constant 0 : index
      %c0_24 = arith.constant 0 : index
      %39 = vector.load %arg5[%c0_22, %c0_23, %c0_24] : memref<1x1x128xi32, #tpu.memory_space<vmem>>, vector<1x1x128xi32>
      tpu.vector_store %arg5[%c0_22, %c0_23, %c0_24], %38 {strides = array<i32>} : memref<1x1x128xi32, #tpu.memory_space<vmem>>, vector<1x1x128xi32>,
    } else {
    }
    %true = arith.constant true
    %10 = arith.xori %7, %true : i1
    %11 = arith.extui %10 : i1 to i32
    %c0_i32_4 = arith.constant 0 : i32
    %12 = arith.cmpi ne, %11, %c0_i32_4 : i32
    scf.if %12 {
      %c0 = arith.constant 0 : index
      %c0_5 = arith.constant 0 : index
      %13 = vector.load %arg2[%c0, %c0_5] : memref<4x128xf32, #tpu.memory_space<vmem>>, vector<4x128xf32>
      %c0_6 = arith.constant 0 : index
      %c0_7 = arith.constant 0 : index
      %14 = vector.load %arg3[%c0_6, %c0_7] : memref<4x128xf32, #tpu.memory_space<vmem>>, vector<4x128xf32>
      %cst = arith.constant 0.000000e+00 : f32
      %15 = vector.broadcast %cst : f32 to vector<4x128xf32>
      %16 = arith.cmpf one, %14, %15 : vector<4x128xf32>
      %cst_8 = arith.constant 1.000000e+00 : f32
      %17 = vector.broadcast %cst_8 : f32 to vector<4x128xf32>
      %18 = arith.divf %17, %14 : vector<4x128xf32>
      %19 = arith.subf %13, %18 : vector<4x128xf32>
      %20 = math.absf %19 : vector<4x128xf32>
      %cst_9 = arith.constant 0.000000e+00 : f32
      %21 = vector.broadcast %cst_9 : f32 to vector<4x128xf32>
      %22 = arith.select %16, %20, %21 : vector<4x128xi1>, vector<4x128xf32>
      %c0_10 = arith.constant 0 : index
      %c0_11 = arith.constant 0 : index
      %c0_12 = arith.constant 0 : index
      %23 = vector.load %arg4[%c0_10, %c0_11, %c0_12] : memref<1x1x128xf32, #tpu.memory_space<vmem>>, vector<1x1x128xf32>
      %cst_13 = arith.constant dense<0.000000e+00> : vector<128xf32>
      %24 = vector.multi_reduction <add>, %22, %cst_13 [0] : vector<4x128xf32> to vector<128xf32>
      %25 = vector.shape_cast %24 : vector<128xf32> to vector<1x1x128xf32>
      %26 = arith.addf %23, %25 : vector<1x1x128xf32>
      %c0_14 = arith.constant 0 : index
      %c0_15 = arith.constant 0 : index
      %c0_16 = arith.constant 0 : index
      %27 = vector.load %arg4[%c0_14, %c0_15, %c0_16] : memref<1x1x128xf32, #tpu.memory_space<vmem>>, vector<1x1x128xf32>
      tpu.vector_store %arg4[%c0_14, %c0_15, %c0_16], %26 {strides = array<i32>} : memref<1x1x128xf32, #tpu.memory_space<vmem>>, vector<1x1x128xf32>,
      %c0_17 = arith.constant 0 : index
      %c0_18 = arith.constant 0 : index
      %c0_19 = arith.constant 0 : index
      %28 = vector.load %arg5[%c0_17, %c0_18, %c0_19] : memref<1x1x128xi32, #tpu.memory_space<vmem>>, vector<1x1x128xi32>
      %29 = arith.extui %16 : vector<4x128xi1> to vector<4x128xi32>
      %cst_20 = arith.constant dense<0> : vector<128xi32>
      %30 = vector.multi_reduction <add>, %29, %cst_20 [0] : vector<4x128xi32> to vector<128xi32>
      %31 = vector.shape_cast %30 : vector<128xi32> to vector<1x1x128xi32>
      %32 = arith.addi %28, %31 : vector<1x1x128xi32>
      %c0_21 = arith.constant 0 : index
      %c0_22 = arith.constant 0 : index
      %c0_23 = arith.constant 0 : index
      %33 = vector.load %arg5[%c0_21, %c0_22, %c0_23] : memref<1x1x128xi32, #tpu.memory_space<vmem>>, vector<1x1x128xi32>
      tpu.vector_store %arg5[%c0_21, %c0_22, %c0_23], %32 {strides = array<i32>} : memref<1x1x128xi32, #tpu.memory_space<vmem>>, vector<1x1x128xi32>,
    } else {
    }
    return
  }
  func.func @transform_0(%arg0: i32, %arg1: i32) -> (i32, i32) {
    %c1_i32 = arith.constant 1 : i32
    %0 = arith.muli %arg0, %c1_i32 : i32
    %1 = arith.addi %0, %arg1 : i32
    %c0_i32 = arith.constant 0 : i32
    %2 = arith.minsi %1, %c0_i32 : i32
    %c0_i32_0 = arith.constant 0 : i32
    %c0_i32_1 = arith.constant 0 : i32
    return %2, %c0_i32_0 : i32, i32
  }
  func.func @transform_1(%arg0: i32, %arg1: i32) -> (i32, i32) {
    %c1_i32 = arith.constant 1 : i32
    %0 = arith.muli %arg0, %c1_i32 : i32
    %1 = arith.addi %0, %arg1 : i32
    %c0_i32 = arith.constant 0 : i32
    %2 = arith.minsi %1, %c0_i32 : i32
    %c0_i32_0 = arith.constant 0 : i32
    %c0_i32_1 = arith.constant 0 : i32
    return %2, %c0_i32_0 : i32, i32
  }
  func.func @transform_2(%arg0: i32, %arg1: i32) -> (i32, i32, i32) {
    %c0_i32 = arith.constant 0 : i32
    %c0_i32_0 = arith.constant 0 : i32
    %c0_i32_1 = arith.constant 0 : i32
    return %arg0, %c0_i32, %c0_i32_0 : i32, i32, i32
  }
  func.func @transform_3(%arg0: i32, %arg1: i32) -> (i32, i32, i32) {
    %c0_i32 = arith.constant 0 : i32
    %c0_i32_0 = arith.constant 0 : i32
    %c0_i32_1 = arith.constant 0 : i32
    return %arg0, %c0_i32, %c0_i32_0 : i32, i32, i32
  }
}

</mosaic_0001>

<bundles_post_ra>
// kernel: tpu_custom_call.1
= control target key start
LH: loop header
LB: loop body
LE: loop exit
PB: predicated region body
PF: predicated region fallthrough
CT: control target
= control target key end

     0   :  { %9 = vsyncpa [#allocation3], 0  ;;  %s310_s0 = inlined_call_operand.hbm [shape: f32[4,128], index: 0, kind: input, shape index: {}]   ;;  %s311_s1 = inlined_call_operand.hbm [shape: f32[4,128], index: 1, kind: input, shape index: {}]   ;;  %s312_s2 = inlined_call_operand.hbm [shape: f32[1,1,128], index: 2, kind: output, shape index: {0}]   ;;  %s313_s3 = inlined_call_operand.hbm [shape: s32[1,1,128], index: 3, kind: output, shape index: {1}]  }
   0x1   :  { %10 = vsyncpa [#allocation6], 0 }
   0x2   :  { %11 = vsyncpa [#allocation4], 0 }
   0x3   :  { %12 = vsyncpa [#allocation9], 0  ;;  %s268_s12 = smov [#allocation2]   ;;  %s269_s14 = smov [#allocation5]  }
   0x4   :  { %s24_s13 = sshll.u32 %s268_s12, 4  ;;  %s39_s15 = sshll.u32 %s269_s14, 4  ;;  %s25_s13 = int_to_ptr.vmem [resolvable:$true] %s24_s13  ;;  %s40_s15 = int_to_ptr.vmem [resolvable:$true] %s39_s15 }
   0x5   :  { %s188_s16 = scalar_lea.vmem %s25_s13, 64  ;;  %p193_p1 = scmp.lt.s32.totalorder %s25_s13, %s25_s13 }
   0x6   :  { %p189_p0 = scmp.ne.s32.totalorder %s25_s13, %s188_s16  ;;  %p194_p2 = scmp.lt.s32.totalorder %s188_s16, %s188_s16 }
   0x8   :  { %p195_p3 = por %p194_p2, %p193_p1 }
   0xa   :  { %p196_p4 = pnand %p195_p3, %p189_p0 }
   0xc   :  { %199 = shalt.err (!%p196_p4)
}
   0xd   :  { %27 = dma.hbm_to_vmem [thread:$0]  %s310_s0, 64, %s25_s13, [#allocation3]  }
   0xe   :  { %s208_s19 = scalar_lea.vmem %s40_s15, 64  ;;  %p213_p6 = scmp.lt.s32.totalorder %s40_s15, %s40_s15 }
   0xf   :  { %p209_p5 = scmp.ne.s32.totalorder %s40_s15, %s208_s19  ;;  %p214_p7 = scmp.lt.s32.totalorder %s208_s19, %s208_s19 }
  0x11   :  { %p215_p8 = por %p214_p7, %p213_p6 }
  0x13   :  { %p216_p9 = pnand %p215_p8, %p209_p5 }
  0x15   :  { %219 = shalt.err (!%p216_p9)
}
  0x16   :  { %42 = dma.hbm_to_vmem [thread:$0]  %s311_s1, 64, %s40_s15, [#allocation6]  }
  0x17   :  { %260 = dma.done.wait [#allocation3], 64  }
  0x18   :  { %261 = vsyncadd [#allocation3], 4294967232 }
  0x19   :  { %262 = dma.done.wait [#allocation6], 64  }
  0x1a   :  { %263 = vsyncadd [#allocation6], 4294967232  ;;  %v270_v0 = vmov 0.0   ;;  %v271_v1 = vmov 0   ;;  %v109_v2 = vld [vmem:[#allocation5] sm:$0xf] }
  0x1b   :  { %59 = vst [vmem:[#allocation7] sm:$0x1] %v270_v0  ;;  %60 = vst [vmem:[#allocation8] sm:$0x1] %v271_v1  ;;  %vm117_vm0 = vcmask 1043456   ;;  %vm110_vm1 = vcmp.ne.f32.partialorder %v109_v2, 0.0  ;;  %178 = vrcp.f32 %v109_v2 }
  0x1c   :  { %v128_v3 = vsel %vm110_vm1, 1, %v271_v1  ;;  %v108_v9 = vld [vmem:[#allocation2] sm:$0xf]  ;;  %s272_s0 = smov [#allocation8]  }
  0x1d   :  { %v129_v4 = vsel %vm117_vm0, %v128_v3, 0  ;;  %s154_s1 = sshll.u32 %s272_s0, 4  ;;  %s155_s1 = int_to_ptr.vmem [resolvable:$true] %s154_s1 }
  0x1e   :  { %v130_v5 = vrot.slane %v129_v4, 4  ;;  %s220_s22 = scalar_lea.vmem %s155_s1, 16  ;;  %s224_s23 = scalar_lea.vmem %s155_s1, 32 }
  0x1f   :  { %p221_p10 = scmp.ne.s32.totalorder %s155_s1, %s220_s22  ;;  %p225_p11 = scmp.lt.s32.totalorder %s155_s1, %s155_s1 }
  0x20   :  { %v131_v6 = vadd.s32 %v130_v5, %v129_v4  ;;  %p226_p12 = scmp.lt.s32.totalorder %s224_s23, %s220_s22 }
  0x22   :  { %v132_v7 = vrot.slane %v131_v6, 2  ;;  %v127_v11 = vld [vmem:[#allocation8] sm:$0x1]  ;;  %p227_p13 = por %p226_p12, %p225_p11 }
  0x24   :  { %v133_v8 = vadd.s32 %v132_v7, %v131_v6  ;;  %p228_p0 = pnand %p227_p13, %p221_p10 }
  0x26   :  { %v134_v10 = vrot.slane %v133_v8, 1 }
  0x28   :  { %v179_v12 = vpop.eup %178  ;;  %v135_v13 = vadd.s32 %v134_v10, %v133_v8 }
  0x29   :  { %v113_v14 = vsub.f32 %v108_v9, %v179_v12 }
  0x2a   :  { %v136_v15 = vadd.s32 %v135_v13, %v127_v11 }
  0x2b   :  { %v114_v16 = vand.u32 2147483647, %v113_v14 }
  0x2c   :  { %137 = vst [vmem:[#allocation8] sm:$0x1] %v136_v15 }
  0x2d   :  { %v115_v17 = vsel %vm110_vm1, %v114_v16, 0.0 }
  0x2e   :  { %231 = shalt.err (!%p228_p0)
}
  0x2f   :  { %157 = dma.vmem_to_hbm [thread:$0]  %s155_s1, 16, %s313_s3, [#allocation9]   ;;  %v118_v18 = vsel %vm117_vm0, %v115_v17, 0.0  ;;  %v116_v24 = vld [vmem:[#allocation7] sm:$0x1] }
  0x30   :  { %v119_v19 = vrot.slane %v118_v18, 4  ;;  %s273_s26 = smov [#allocation7]  }
  0x31   :  { %s144_s27 = sshll.u32 %s273_s26, 4  ;;  %s145_s27 = int_to_ptr.vmem [resolvable:$true] %s144_s27 }
  0x32   :  { %v120_v20 = vadd.f32 %v119_v19, %v118_v18  ;;  %s240_s28 = scalar_lea.vmem %s145_s27, 16  ;;  %s244_s29 = scalar_lea.vmem %s145_s27, 32 }
  0x33   :  { %p241_p1 = scmp.ne.s32.totalorder %s145_s27, %s240_s28  ;;  %p245_p2 = scmp.lt.s32.totalorder %s145_s27, %s145_s27 }
  0x34   :  { %v121_v21 = vrot.slane %v120_v20, 2  ;;  %p246_p3 = scmp.lt.s32.totalorder %s244_s29, %s240_s28 }
  0x36   :  { %v122_v22 = vadd.f32 %v121_v21, %v120_v20  ;;  %p247_p4 = por %p246_p3, %p245_p2 }
  0x38   :  { %v123_v23 = vrot.slane %v122_v22, 1  ;;  %p248_p5 = pnand %p247_p4, %p241_p1 }
  0x3a   :  { %v124_v25 = vadd.f32 %v123_v23, %v122_v22 }
  0x3c   :  { %v125_v26 = vadd.f32 %v124_v25, %v116_v24 }
  0x3e   :  { %126 = vst [vmem:[#allocation7] sm:$0x1] %v125_v26 }
  0x3f   :  { %251 = shalt.err (!%p248_p5)
}
  0x40   :  { %147 = dma.vmem_to_hbm [thread:$0]  %s145_s27, 16, %s312_s2, [#allocation4]  }
  0x41   :  { %264 = dma.done.wait [#allocation4], 16  }
  0x42   :  { %265 = vsyncadd [#allocation4], 4294967280 }
  0x43   :  { %266 = dma.done.wait [#allocation9], 16  }
  0x44   :  { %267 = vsyncadd [#allocation9], 4294967280 }
  0x45   :  { %164 = vsyncpa [#allocation3], 1 }
  0x46   :  { %165 = vsyncpa [#allocation6], 1 }
  0x47   :  { %166 = vsyncpa [#allocation4], 1 }
  0x48   :  { %167 = vsyncpa [#allocation9], 1 }

</bundles_post_ra>
